<compile_context>
chip_gen: v7x
topology: tpu7x:2x2x1
jax: 0.10.0
libtpu: 0.0.40
codegen_flags: <defaults>
</compile_context>

<pallas_src>
import jax
import jax.numpy as jnp
from jax.experimental import pallas as pl
from jax.experimental.pallas import tpu as pltpu


_LANES = 128                 # batch elements per kernel-output row (lane-dense)
_ROW_W = 2 * _LANES          # 256 interleaved input values per row: [f0, f1, f0, f1, ...]
_MAX_BLOCK_ROWS = 2048       # x block (2048, 256) f32 = 2 MiB, out block 1 MiB; double
                             # buffered + in-kernel temporaries stays < 32 MiB on all gens.
_TARGET_BLOCKS = 8           # aim for >= 8 grid steps: both v7x TensorCores + DMA overlap.


def _round_up(a: int, m: int) -> int:
    return ((a + m - 1) // m) * m


def _actor_fused_kernel(params_ref, e_ref, x_ref, o_ref):
    """Fused affine map on interleaved input rows.

    params_ref: (3,) f32 SMEM       -> [w0, w1, b]  (fused weights / bias)
    e_ref:      (256, 256) bf16     -> constant 0/1 de-interleave matrix (VMEM-resident)
    x_ref:      (tS, 256) f32 VMEM  -> 128 batch elements per row, lanes = [f0, f1, ...]
    o_ref:      (tS, 128) f32 VMEM  -> y for the same 128 batch elements per row
    """
    w0 = params_ref[0]
    w1 = params_ref[1]
    b = params_ref[2]

    x = x_ref[...]
    e = e_ref[...]

    # Exact 3-way bf16 split of the f32 input (x == hi + mid + lo to ~2^-25 rel.), so the
    # bf16 MXU reproduces the f32 values exactly when multiplied by the 0/1 selection
    # matrix and accumulated in f32.  (TODO(synk): if an activation is ever inserted
    # between the two Linears, the algebraic fusion in the wrapper must be removed.)
    hi = x.astype(jnp.bfloat16)
    r1 = x - hi.astype(jnp.float32)
    mid = r1.astype(jnp.bfloat16)
    lo = (r1 - mid.astype(jnp.float32)).astype(jnp.bfloat16)

    # De-interleave on the MXU: z[:, :128] = feature-0 lanes, z[:, 128:] = feature-1 lanes.
    z = (jnp.dot(hi, e, preferred_element_type=jnp.float32)
         + jnp.dot(mid, e, preferred_element_type=jnp.float32)
         + jnp.dot(lo, e, preferred_element_type=jnp.float32))
    f0 = z[:, :_LANES]
    f1 = z[:, _LANES:]

    # Fused affine map in f32 on the VPU; lane-dense (tS, 128) store.
    o_ref[...] = f0 * w0 + f1 * w1 + b


def actor_net_forward(x, w1, b1, w2, b2):
    """ActorNet forward.  x: (B, 2) f32.  PyTorch-layout params:
    w1: (H, 2), b1: (H,), w2: (1, H), b2: (1,).  Returns (B, 1) f32."""
    B = x.shape[0]
    f32 = jnp.float32
    x = x.astype(f32)

    # --- Exact algebraic fusion of the two Linears (valid: no activation in between).
    #     Elementwise ops only (no XLA dot), so the fused params are exact f32.
    w2v = w2.astype(f32).reshape(-1)                                  # (H,)
    w_fused = jnp.sum(w1.astype(f32) * w2v[:, None], axis=0)          # (2,)
    b_fused = jnp.sum(b1.astype(f32) * w2v) + b2.astype(f32)[0]       # scalar
    params = jnp.concatenate([w_fused, b_fused[None]])                # (3,) = [w0, w1, b]

    # --- Constant 0/1 de-interleave matrix (exact in bf16).
    l = jnp.arange(_ROW_W, dtype=jnp.int32)[:, None]                  # (256, 1)
    c = jnp.arange(_ROW_W, dtype=jnp.int32)[None, :]                  # (1, 256)
    e_mat = (((c < _LANES) & (l == 2 * c)) |
             ((c >= _LANES) & (l == 2 * (c - _LANES) + 1))).astype(jnp.bfloat16)

    # --- x stays interleaved: contiguous reshape to (rows, 256) lane slabs, no transpose.
    #     Zero-copy when B is a multiple of 128 (and >= 1024); otherwise only the ragged
    #     tail is zero-padded.
    rows = max(pl.cdiv(B, _LANES), 8)          # >= 8 rows so all matmuls have >= 8 sublanes
    x_flat = x.reshape(-1)                     # (2B,)
    need = rows * _ROW_W
    if need != 2 * B:
        x_flat = jnp.pad(x_flat, (0, need - 2 * B))
    x2d = x_flat.reshape(rows, _ROW_W)

    # --- Row tiling: multiples of 8, capped for VMEM, >= ~8 grid steps at large B.
    block_rows = min(_MAX_BLOCK_ROWS, _round_up(pl.cdiv(rows, _TARGET_BLOCKS), 8))
    block_rows = min(block_rows, rows)
    n_blocks = pl.cdiv(rows, block_rows)

    out = pl.pallas_call(
        _actor_fused_kernel,
        out_shape=jax.ShapeDtypeStruct((rows, _LANES), f32),
        grid_spec=pltpu.PrefetchScalarGridSpec(
            num_scalar_prefetch=0,
            grid=(n_blocks,),
            in_specs=[
                # Fused (w0, w1, b): three SMEM scalars (no padded VMEM tile for them).
                pl.BlockSpec(memory_space=pltpu.MemorySpace.SMEM),
                # De-interleave matrix: block index never changes -> stays resident.
                pl.BlockSpec((_ROW_W, _ROW_W), lambda i: (0, 0)),
                # Interleaved input rows: dense (block_rows, 256) f32 tiles.
                pl.BlockSpec((block_rows, _ROW_W), lambda i: (i, 0)),
            ],
            out_specs=pl.BlockSpec((block_rows, _LANES), lambda i: (i, 0)),
        ),
        compiler_params=pltpu.CompilerParams(
            # Row axis is embarrassingly parallel -> shard across TensorCores on v7x.
            dimension_semantics=("parallel",),
            vmem_limit_bytes=32 * 1024 * 1024,
        ),
        cost_estimate=pl.CostEstimate(
            flops=3 * 2 * rows * _ROW_W * _ROW_W + 4 * rows * _LANES,
            transcendentals=0,
            bytes_accessed=rows * (_ROW_W + _LANES) * 4,
        ),
    )(params, e_mat, x2d)

    # (rows, 128) in flat row-major order is exactly y_0 .. ; drop padding if any.
    y_flat = out.reshape(-1)
    if y_flat.shape[0] != B:
        y_flat = y_flat[:B]
    return y_flat.reshape(B, 1)


if __name__ == "__main__":
    hidden_dim = 4

    key = jax.random.PRNGKey(0)
    k_x, k_w1, k_b1, k_w2, k_b2 = jax.random.split(key, 5)

    # Deterministic params, roughly PyTorch's default Linear init:
    # U(-1/sqrt(fan_in), 1/sqrt(fan_in)).
    bound1 = 1.0 / jnp.sqrt(2.0)
    bound2 = 1.0 / jnp.sqrt(float(hidden_dim))
    w1 = jax.random.uniform(k_w1, (hidden_dim, 2), jnp.float32, -bound1, bound1)
    b1 = jax.random.uniform(k_b1, (hidden_dim,), jnp.float32, -bound1, bound1)
    w2 = jax.random.uniform(k_w2, (1, hidden_dim), jnp.float32, -bound2, bound2)
    b2 = jax.random.uniform(k_b2, (1,), jnp.float32, -bound2, bound2)

    fwd = jax.jit(actor_net_forward)

    # Small demo batch plus two extra shapes exercising the padding and multi-block paths.
    for batch in (8, 300, 2048):
        x = jax.random.normal(jax.random.fold_in(k_x, batch), (batch, 2), jnp.float32)
        out = jax.block_until_ready(fwd(x, w1, b1, w2, b2))

        # Reference in plain JAX (same math as the PyTorch forward, unfused).
        ref = (x @ w1.T + b1) @ w2.T + b2
        assert out.shape == (batch, 1)
        assert jnp.allclose(out, ref, atol=1e-5, rtol=1e-5), (
            batch, float(jnp.max(jnp.abs(out - ref))))

    print("KERNEL_OK")
</pallas_src>

<mosaic_0001>
module attributes {stable_mosaic.version = 11 : i64} {
  func.func @_actor_fused_kernel(%arg0: i32, %arg1: memref<3xf32, #tpu.memory_space<smem>>, %arg2: memref<256x256xbf16, #tpu.memory_space<vmem>>, %arg3: memref<8x256xf32, #tpu.memory_space<vmem>>, %arg4: memref<8x128xf32, #tpu.memory_space<vmem>>) attributes {dimension_semantics = [#tpu.dimension_semantics<parallel>], iteration_bounds = array<i64: 1>, scalar_prefetch = 0 : i64, scratch_operands = 0 : i64, tpu.core_type = #tpu.core_type<tc>, window_params = [{transform_indices = @transform_0, window_bounds = array<i64: 3>}, {pipeline_mode = #tpu.pipeline_mode<synchronous>, transform_indices = @transform_1, window_bounds = array<i64: 256, 256>}, {transform_indices = @transform_2, window_bounds = array<i64: 8, 256>}, {transform_indices = @transform_3, window_bounds = array<i64: 8, 128>}]} {
    %c0 = arith.constant 0 : index
    %0 = memref.load %arg1[%c0] : memref<3xf32, #tpu.memory_space<smem>>
    %c1 = arith.constant 1 : index
    %1 = memref.load %arg1[%c1] : memref<3xf32, #tpu.memory_space<smem>>
    %c2 = arith.constant 2 : index
    %2 = memref.load %arg1[%c2] : memref<3xf32, #tpu.memory_space<smem>>
    %c0_0 = arith.constant 0 : index
    %c0_1 = arith.constant 0 : index
    %3 = vector.load %arg3[%c0_0, %c0_1] : memref<8x256xf32, #tpu.memory_space<vmem>>, vector<8x256xf32>
    %c0_2 = arith.constant 0 : index
    %c0_3 = arith.constant 0 : index
    %4 = vector.load %arg2[%c0_2, %c0_3] : memref<256x256xbf16, #tpu.memory_space<vmem>>, vector<256x256xbf16>
    %5 = arith.truncf %3 : vector<8x256xf32> to vector<8x256xbf16>
    %6 = arith.extf %5 : vector<8x256xbf16> to vector<8x256xf32>
    %7 = arith.subf %3, %6 : vector<8x256xf32>
    %8 = arith.truncf %7 : vector<8x256xf32> to vector<8x256xbf16>
    %9 = arith.extf %8 : vector<8x256xbf16> to vector<8x256xf32>
    %10 = arith.subf %7, %9 : vector<8x256xf32>
    %11 = arith.truncf %10 : vector<8x256xf32> to vector<8x256xbf16>
    %cst = arith.constant dense<0.000000e+00> : vector<8x256xf32>
    %12 = tpu.matmul %5, %4, %cst {dimension_numbers = #tpu.dot_dimension_numbers<[1], [0], [0], [1], [0, 0, 1, 1], [], []>} : vector<8x256xbf16>, vector<256x256xbf16>, vector<8x256xf32> -> vector<8x256xf32>
    %cst_4 = arith.constant dense<0.000000e+00> : vector<8x256xf32>
    %13 = tpu.matmul %8, %4, %cst_4 {dimension_numbers = #tpu.dot_dimension_numbers<[1], [0], [0], [1], [0, 0, 1, 1], [], []>} : vector<8x256xbf16>, vector<256x256xbf16>, vector<8x256xf32> -> vector<8x256xf32>
    %14 = arith.addf %12, %13 : vector<8x256xf32>
    %cst_5 = arith.constant dense<0.000000e+00> : vector<8x256xf32>
    %15 = tpu.matmul %11, %4, %cst_5 {dimension_numbers = #tpu.dot_dimension_numbers<[1], [0], [0], [1], [0, 0, 1, 1], [], []>} : vector<8x256xbf16>, vector<256x256xbf16>, vector<8x256xf32> -> vector<8x256xf32>
    %16 = arith.addf %14, %15 : vector<8x256xf32>
    %17 = vector.extract_strided_slice %16 {offsets = [0, 0], sizes = [8, 128], strides = [1, 1]} : vector<8x256xf32> to vector<8x128xf32>
    %18 = vector.extract_strided_slice %16 {offsets = [0, 128], sizes = [8, 128], strides = [1, 1]} : vector<8x256xf32> to vector<8x128xf32>
    %19 = vector.broadcast %0 : f32 to vector<8x128xf32>
    %20 = arith.mulf %17, %19 : vector<8x128xf32>
    %21 = vector.broadcast %1 : f32 to vector<8x128xf32>
    %22 = arith.mulf %18, %21 : vector<8x128xf32>
    %23 = arith.addf %20, %22 : vector<8x128xf32>
    %24 = vector.broadcast %2 : f32 to vector<8x128xf32>
    %25 = arith.addf %23, %24 : vector<8x128xf32>
    %c0_6 = arith.constant 0 : index
    %c0_7 = arith.constant 0 : index
    %26 = vector.load %arg4[%c0_6, %c0_7] : memref<8x128xf32, #tpu.memory_space<vmem>>, vector<8x128xf32>
    tpu.vector_store %arg4[%c0_6, %c0_7], %25 {strides = array<i32>} : memref<8x128xf32, #tpu.memory_space<vmem>>, vector<8x128xf32>,
    return
  }
  func.func @transform_0(%arg0: i32) -> i32 {
    %c0_i32 = arith.constant 0 : i32
    %c0_i32_0 = arith.constant 0 : i32
    return %c0_i32 : i32
  }
  func.func @transform_1(%arg0: i32) -> (i32, i32) {
    %c0_i32 = arith.constant 0 : i32
    %c0_i32_0 = arith.constant 0 : i32
    %c0_i32_1 = arith.constant 0 : i32
    return %c0_i32, %c0_i32_0 : i32, i32
  }
  func.func @transform_2(%arg0: i32) -> (i32, i32) {
    %c0_i32 = arith.constant 0 : i32
    %c0_i32_0 = arith.constant 0 : i32
    return %arg0, %c0_i32 : i32, i32
  }
  func.func @transform_3(%arg0: i32) -> (i32, i32) {
    %c0_i32 = arith.constant 0 : i32
    %c0_i32_0 = arith.constant 0 : i32
    return %arg0, %c0_i32 : i32, i32
  }
}

</mosaic_0001>

<bundles_post_ra>
// kernel: actor_net_forward.1
= control target key start
LH: loop header
LB: loop body
LE: loop exit
PB: predicated region body
PF: predicated region fallthrough
CT: control target
= control target key end

     0   :  { %8 = vsyncpa [#allocation3], 0  ;;  %s728_s0 = inlined_call_operand.vmem [shape: f32[3], index: 0, kind: input, shape index: {}]   ;;  %s729_s1 = inlined_call_operand.vmem [shape: bf16[256,256], index: 1, kind: input, shape index: {}]   ;;  %s730_s2 = inlined_call_operand.vmem [shape: f32[8,256], index: 2, kind: input, shape index: {}]   ;;  %s731_s3 = inlined_call_operand.vmem [shape: f32[8,128], index: 3, kind: output, shape index: {}]  }
   0x1   :  { %s15_s14 = sshll.u32 %s728_s0, 4  ;;  %s16_s14 = int_to_ptr.vmem [resolvable:$true] %s15_s14 }
   0x2   :  { %s465_s15 = scalar_lea.vmem %s16_s14, 16  ;;  %p470_p1 = scmp.lt.s32.totalorder %s16_s14, %s16_s14 }
   0x3   :  { %p466_p0 = scmp.ne.s32.totalorder %s16_s14, %s465_s15  ;;  %p471_p2 = scmp.lt.s32.totalorder %s465_s15, %s465_s15 }
   0x5   :  { %p472_p3 = por %p471_p2, %p470_p1 }
   0x7   :  { %p473_p4 = pnand %p472_p3, %p466_p0 }
   0x9   :  { %476 = shalt.err (!%p473_p4)
}
   0xa   :  { %s479_s16 = smov [#allocation2]  }
   0xb   :  { %18 = dma.vmem_to_smem %s16_s14, 16, %s479_s16, [#allocation3]  }
   0xc   :  { %477 = dma.done.wait [#allocation3], 16  }
   0xd   :  { %478 = vsyncadd [#allocation3], 4294967280 }
   0xe   :  { %26 = sfence }
   0xf   :  { %v506_v0 = vld [vmem:[%s729_s1 + $0x4] ss:$8 sps:$4 sm:$0xff]   ;;  %v511_v1 = vld [vmem:[%s729_s1] ss:$8 sps:$4 sm:$0xff]   ;;  %v517_v2 = vld [vmem:[%s729_s1 + $0x14] ss:$8 sps:$4 sm:$0xff]  }
  0x10   :  { %279 = vmatprep.subr.bf16.mxu0 %v506_v0  ;;  %238 = vmatprep.subr.bf16.mxu1 %v506_v0  ;;  %v524_v3 = vld [vmem:[%s729_s1 + $0x10] ss:$8 sps:$4 sm:$0xff]   ;;  %v531_v4 = vld [vmem:[%s729_s1 + $0x24] ss:$8 sps:$4 sm:$0xff]   ;;  %v538_v5 = vld [vmem:[%s729_s1 + $0x20] ss:$8 sps:$4 sm:$0xff]  }
  0x11   :  { %280 = vmatpush1.bf16.msra.mxu0 %v511_v1  ;;  %239 = vmatpush1.bf16.msra.mxu1 %v511_v1  ;;  %v545_v6 = vld [vmem:[%s729_s1 + $0x34] ss:$8 sps:$4 sm:$0xff]   ;;  %v552_v7 = vld [vmem:[%s729_s1 + $0x30] ss:$8 sps:$4 sm:$0xff]   ;;  %v559_v8 = vld [vmem:[%s729_s1 + $0x44] ss:$8 sps:$4 sm:$0xff]  }
  0x12   :  { %281 = vmatprep.subr.bf16.mxu0 %v517_v2  ;;  %240 = vmatprep.subr.bf16.mxu1 %v517_v2  ;;  %v566_v9 = vld [vmem:[%s729_s1 + $0x40] ss:$8 sps:$4 sm:$0xff]   ;;  %v573_v10 = vld [vmem:[%s729_s1 + $0x54] ss:$8 sps:$4 sm:$0xff]   ;;  %v580_v11 = vld [vmem:[%s729_s1 + $0x50] ss:$8 sps:$4 sm:$0xff]  }
  0x13   :  { %v587_v12 = vld [vmem:[%s729_s1 + $0x64] ss:$8 sps:$4 sm:$0xff]   ;;  %v597_v15 = vld [vmem:[%s729_s1 + $0x60] ss:$8 sps:$4 sm:$0xff]   ;;  %v604_v16 = vld [vmem:[%s729_s1 + $0x74] ss:$8 sps:$4 sm:$0xff]  }
  0x14   :  { %v31_v13 = vld [vmem:[%s730_s2 + $0x8] sm:$0xff]  ;;  %v611_v19 = vld [vmem:[%s729_s1 + $0x70] ss:$8 sps:$4 sm:$0xff]   ;;  %v632_v23 = vld [vmem:[%s729_s1 + $0x94] ss:$8 sps:$4 sm:$0xff]   ;;  %s376_s27 = sld [smem:[#allocation2 + $0x1]] }
  0x15   :  { %282 = vmatpush1.bf16.msra.mxu0 %v524_v3  ;;  %241 = vmatpush1.bf16.msra.mxu1 %v524_v3  ;;  %v65_v14 = vpack.c.bf16 %v31_v13, %v31_v13  ;;  %v618_v20 = vld [vmem:[%s729_s1 + $0x84] ss:$8 sps:$4 sm:$0xff]   ;;  %v625_v22 = vld [vmem:[%s729_s1 + $0x80] ss:$8 sps:$4 sm:$0xff]   ;;  %v639_v24 = vld [vmem:[%s729_s1 + $0x90] ss:$8 sps:$4 sm:$0xff]  }
  0x16   :  { %283 = vmatprep.subr.bf16.mxu0 %v531_v4  ;;  %242 = vmatprep.subr.bf16.mxu1 %v531_v4  ;;  %v646_v25 = vld [vmem:[%s729_s1 + $0xa4] ss:$8 sps:$4 sm:$0xff]   ;;  %v653_v26 = vld [vmem:[%s729_s1 + $0xa0] ss:$8 sps:$4 sm:$0xff]   ;;  %v660_v27 = vld [vmem:[%s729_s1 + $0xb4] ss:$8 sps:$4 sm:$0xff]  }
  0x17   :  { %v67_v17 = vunpack.c.l.bf16 %v65_v14  ;;  %311 = vmatprep.mubr.bf16.mxu0 %v65_v14  ;;  %v667_v28 = vld [vmem:[%s729_s1 + $0xb0] ss:$8 sps:$4 sm:$0xff]   ;;  %v453_v29 = vld [vmem:[%s729_s1 + $0xc4] ss:$8 sps:$4 sm:$0xff]   ;;  %v455_v30 = vld [vmem:[%s729_s1 + $0xc0] ss:$8 sps:$4 sm:$0xff]  }
  0x18   :  { %v456_v31 = vld [vmem:[%s729_s1 + $0xd4] ss:$8 sps:$4 sm:$0xff]   ;;  %v458_v32 = vld [vmem:[%s729_s1 + $0xd0] ss:$8 sps:$4 sm:$0xff]   ;;  %v30_v33 = vld [vmem:[%s730_s2] sm:$0xff]  ;;  %s377_s28 = sld [smem:[#allocation2 + $0x2]] }
  0x19   :  { %284 = vmatpush1.bf16.msra.mxu0 %v538_v5  ;;  %243 = vmatpush1.bf16.msra.mxu1 %v538_v5  ;;  %v69_v18 = vsub.f32 %v31_v13, %v67_v17  ;;  %v459_v34 = vld [vmem:[%s729_s1 + $0xe4] ss:$8 sps:$4 sm:$0xff]   ;;  %v64_v35 = vpack.c.bf16 %v30_v33, %v30_v33  ;;  %v461_v36 = vld [vmem:[%s729_s1 + $0xe0] ss:$8 sps:$4 sm:$0xff]   ;;  %v462_v38 = vld [vmem:[%s729_s1 + $0xf4] ss:$8 sps:$4 sm:$0xff]  }
  0x1a   :  { %285 = vmatprep.subr.bf16.mxu0 %v545_v6  ;;  %244 = vmatprep.subr.bf16.mxu1 %v545_v6  ;;  %v464_v40 = vld [vmem:[%s729_s1 + $0xf0] ss:$8 sps:$4 sm:$0xff]   ;;  %s27_s1 = sld [smem:[#allocation2]]  ;;  %v365_v56 = vstv %s376_s27 }
  0x1b   :  { %v71_v21 = vpack.c.bf16 %v69_v18, %v69_v18  ;;  %v66_v39 = vunpack.c.l.bf16 %v64_v35 }
  0x1d   :  { %286 = vmatpush1.bf16.msra.mxu0 %v552_v7  ;;  %245 = vmatpush1.bf16.msra.mxu1 %v552_v7  ;;  %v73_v37 = vunpack.c.l.bf16 %v71_v21  ;;  %v68_v42 = vsub.f32 %v30_v33, %v66_v39 }
  0x1e   :  { %287 = vmatprep.subr.bf16.mxu0 %v559_v8  ;;  %246 = vmatprep.subr.bf16.mxu1 %v559_v8  ;;  %v368_v62 = vstv %s377_s28 }
  0x1f   :  { %270 = vmatprep.mubr.bf16.mxu1 %v71_v21  ;;  %v75_v41 = vsub.f32 %v69_v18, %v73_v37  ;;  %v70_v44 = vpack.c.bf16 %v68_v42, %v68_v42 }
  0x20   :  { %v363_v53 = vstv %s27_s1 }
  0x21   :  { %288 = vmatpush1.bf16.msra.mxu0 %v566_v9  ;;  %247 = vmatpush1.bf16.msra.mxu1 %v566_v9  ;;  %v77_v43 = vpack.c.bf16 %v75_v41, %v75_v41  ;;  %v72_v45 = vunpack.c.l.bf16 %v70_v44 }
  0x22   :  { %289 = vmatprep.subr.bf16.mxu0 %v573_v10  ;;  %248 = vmatprep.subr.bf16.mxu1 %v573_v10 }
  0x23   :  { %v74_v46 = vsub.f32 %v68_v42, %v72_v45 }
  0x25   :  { %290 = vmatpush1.bf16.msra.mxu0 %v580_v11  ;;  %249 = vmatpush1.bf16.msra.mxu1 %v580_v11  ;;  %v76_v47 = vpack.c.bf16 %v74_v46, %v74_v46 }
  0x26   :  { %291 = vmatprep.subr.bf16.mxu0 %v587_v12  ;;  %250 = vmatprep.subr.bf16.mxu1 %v587_v12 }
  0x29   :  { %292 = vmatpush1.bf16.msra.mxu0 %v597_v15  ;;  %251 = vmatpush1.bf16.msra.mxu1 %v597_v15 }
  0x2a   :  { %293 = vmatprep.subr.bf16.mxu0 %v604_v16  ;;  %252 = vmatprep.subr.bf16.mxu1 %v604_v16 }
  0x2d   :  { %294 = vmatpush1.bf16.msra.mxu0 %v611_v19  ;;  %253 = vmatpush1.bf16.msra.mxu1 %v611_v19 }
  0x2e   :  { %295 = vmatprep.subr.bf16.mxu0 %v618_v20  ;;  %254 = vmatprep.subr.bf16.mxu1 %v618_v20 }
  0x31   :  { %296 = vmatpush1.bf16.msra.mxu0 %v625_v22  ;;  %255 = vmatpush1.bf16.msra.mxu1 %v625_v22 }
  0x32   :  { %297 = vmatprep.subr.bf16.mxu0 %v632_v23  ;;  %256 = vmatprep.subr.bf16.mxu1 %v632_v23 }
  0x35   :  { %298 = vmatpush1.bf16.msra.mxu0 %v639_v24  ;;  %257 = vmatpush1.bf16.msra.mxu1 %v639_v24 }
  0x36   :  { %299 = vmatprep.subr.bf16.mxu0 %v646_v25  ;;  %258 = vmatprep.subr.bf16.mxu1 %v646_v25 }
  0x39   :  { %300 = vmatpush1.bf16.msra.mxu0 %v653_v26  ;;  %259 = vmatpush1.bf16.msra.mxu1 %v653_v26 }
  0x3a   :  { %301 = vmatprep.subr.bf16.mxu0 %v660_v27  ;;  %260 = vmatprep.subr.bf16.mxu1 %v660_v27 }
  0x3d   :  { %302 = vmatpush1.bf16.msra.mxu0 %v667_v28  ;;  %261 = vmatpush1.bf16.msra.mxu1 %v667_v28 }
  0x3e   :  { %303 = vmatprep.subr.bf16.mxu0 %v453_v29  ;;  %262 = vmatprep.subr.bf16.mxu1 %v453_v29 }
  0x41   :  { %304 = vmatpush1.bf16.msra.mxu0 %v455_v30  ;;  %263 = vmatpush1.bf16.msra.mxu1 %v455_v30 }
  0x42   :  { %305 = vmatprep.subr.bf16.mxu0 %v456_v31  ;;  %264 = vmatprep.subr.bf16.mxu1 %v456_v31 }
  0x45   :  { %306 = vmatpush1.bf16.msra.mxu0 %v458_v32  ;;  %265 = vmatpush1.bf16.msra.mxu1 %v458_v32 }
  0x46   :  { %307 = vmatprep.subr.bf16.mxu0 %v459_v34  ;;  %266 = vmatprep.subr.bf16.mxu1 %v459_v34 }
  0x49   :  { %308 = vmatpush1.bf16.msra.mxu0 %v461_v36  ;;  %267 = vmatpush1.bf16.msra.mxu1 %v461_v36 }
  0x4a   :  { %309 = vmatprep.subr.bf16.mxu0 %v462_v38  ;;  %268 = vmatprep.subr.bf16.mxu1 %v462_v38 }
  0x4d   :  { %310 = vmatpush1.bf16.msra.mxu0 %v464_v40  ;;  %269 = vmatpush1.bf16.msra.mxu1 %v464_v40 }
  0x4e   :  { %320 = vmatprep.subr.bf16.mxu0 %v506_v0 }
  0x50   :  { %312 = vmatmul.mubr.bf16.vlgmr.msra.gmra.mrb[0].mxu0 %v64_v35  ;;  %271 = vmatmul.mubr.bf16.vlgmr.msra.gmra.mrb[0].mxu1 %v70_v44 }
  0x51   :  { %321 = vmatpush1.bf16.msra.mxu0 %v511_v1  ;;  %352 = vmatprep.mubr.bf16.mxu0 %v77_v43 }
  0x52   :  { %322 = vmatprep.subr.bf16.mxu0 %v517_v2 }
  0x55   :  { %323 = vmatpush1.bf16.msra.mxu0 %v524_v3 }
  0x56   :  { %324 = vmatprep.subr.bf16.mxu0 %v531_v4 }
  0x59   :  { %325 = vmatpush1.bf16.msra.mxu0 %v538_v5 }
  0x5a   :  { %326 = vmatprep.subr.bf16.mxu0 %v545_v6 }
  0x5d   :  { %327 = vmatpush1.bf16.msra.mxu0 %v552_v7 }
  0x5e   :  { %328 = vmatprep.subr.bf16.mxu0 %v559_v8 }
  0x61   :  { %329 = vmatpush1.bf16.msra.mxu0 %v566_v9 }
  0x62   :  { %330 = vmatprep.subr.bf16.mxu0 %v573_v10 }
  0x65   :  { %331 = vmatpush1.bf16.msra.mxu0 %v580_v11 }
  0x66   :  { %332 = vmatprep.subr.bf16.mxu0 %v587_v12 }
  0x69   :  { %333 = vmatpush1.bf16.msra.mxu0 %v597_v15 }
  0x6a   :  { %334 = vmatprep.subr.bf16.mxu0 %v604_v16 }
  0x6d   :  { %335 = vmatpush1.bf16.msra.mxu0 %v611_v19 }
  0x6e   :  { %336 = vmatprep.subr.bf16.mxu0 %v618_v20 }
  0x71   :  { %337 = vmatpush1.bf16.msra.mxu0 %v625_v22 }
  0x72   :  { %338 = vmatprep.subr.bf16.mxu0 %v632_v23 }
  0x75   :  { %339 = vmatpush1.bf16.msra.mxu0 %v639_v24 }
  0x76   :  { %340 = vmatprep.subr.bf16.mxu0 %v646_v25 }
  0x79   :  { %341 = vmatpush1.bf16.msra.mxu0 %v653_v26 }
  0x7a   :  { %342 = vmatprep.subr.bf16.mxu0 %v660_v27 }
  0x7d   :  { %343 = vmatpush1.bf16.msra.mxu0 %v667_v28 }
  0x7e   :  { %344 = vmatprep.subr.bf16.mxu0 %v453_v29 }
  0x81   :  { %345 = vmatpush1.bf16.msra.mxu0 %v455_v30 }
  0x82   :  { %346 = vmatprep.subr.bf16.mxu0 %v456_v31 }
  0x85   :  { %347 = vmatpush1.bf16.msra.mxu0 %v458_v32 }
  0x86   :  { %348 = vmatprep.subr.bf16.mxu0 %v459_v34 }
  0x89   :  { %349 = vmatpush1.bf16.msra.mxu0 %v461_v36 }
  0x8a   :  { %350 = vmatprep.subr.bf16.mxu0 %v462_v38 }
  0x8d   :  { %351 = vmatpush1.bf16.msra.mxu0 %v464_v40 }
  0x90   :  { %353 = vmatmul.mubr.bf16.vlgmr.msra.gmra.mrb[0].mxu0 %v76_v47 }
 0x123   :  { %v272_v48 = vpop.f32.mrb[0].mxu1 }
 0x124   :  { %v274_v49 = vpop.f32.mrb[1].mxu1 }
 0x125   :  { %v276_v50 = vpop.f32.mrb[2].mxu1 }
 0x126   :  { %v277_v51 = vpop.f32.mrb[3].mxu1 }
 0x163   :  { %v354_v52 = vpop.f32.mrb[0].mxu0 }
 0x164   :  { %v410_v54 = vadd.f32 %v354_v52, %v272_v48  ;;  %v356_v55 = vpop.f32.mrb[1].mxu0 }
 0x165   :  { %v411_v57 = vadd.f32 %v356_v55, %v274_v49  ;;  %v358_v58 = vpop.f32.mrb[2].mxu0 }
 0x166   :  { %v364_v59 = vmul.f32 %v410_v54, %v363_v53  ;;  %v359_v60 = vpop.f32.mrb[3].mxu0 }
 0x167   :  { %v366_v61 = vmul.f32 %v411_v57, %v365_v56 }
 0x169   :  { %v367_v63 = vadd.f32 %v366_v61, %v364_v59 }
 0x16b   :  { %v369_v0 = vadd.f32 %v368_v62, %v367_v63 }
 0x16d   :  { %370 = vst [vmem:[%s731_s3] sm:$0xff] %v369_v0 }
 0x16e   :  { %375 = vsyncpa [#allocation3], 1 }

</bundles_post_ra>
